<compile_context>
chip_gen: v6e
topology: v6e:2x2x1
jax: 0.10.0
libtpu: 0.0.40
codegen_flags: <defaults>
</compile_context>

<pallas_src>
import functools

import jax
import jax.numpy as jnp
from jax import lax
from jax.experimental import pallas as pl
from jax.experimental.pallas import tpu as pltpu


# ----------------------------------------------------------------------------
# Kernel
# ----------------------------------------------------------------------------
def _mlp_kernel(num_layers, *refs):
    """Fused MLP.

    refs = (x_ref, w0_ref, b0_ref, ..., w{L-1}_ref, b{L-1}_ref, o_ref)
      x_ref: [batch_tile, n_features] (f32, native batch-major layout)
      w_ref: [out_dim, in_dim]        (f32, PyTorch nn.Linear layout)
      b_ref: [out_dim, 1]             (f32, column for lane broadcast)
      o_ref: [1, batch_tile]          (f32, lane-dense)
    """
    x_ref = refs[0]
    o_ref = refs[-1]
    params = refs[1:-1]

    x = x_ref[...]                                     # [bt, in0]

    # Layer 0: contract W0's in_dim against x's feature axis (A @ B^T on the
    # MXU).  This folds the batch-major -> feature-major transpose into the
    # MXU operand feed; result is already feature-major: [out0, bt].
    w0 = params[0][...]                                # [out0, in0]
    b0 = params[1][...]                                # [out0, 1]
    h = lax.dot_general(w0, x,
                        dimension_numbers=(((1,), (1,)), ((), ())),
                        preferred_element_type=jnp.float32)
    h = h + b0
    if num_layers > 1:
        h = jnp.maximum(h, 0.0)

    # Remaining layers stay feature-major: h_{l+1} = W_l @ h_l + b_l.
    for layer in range(1, num_layers):
        w = params[2 * layer][...]                     # [out, in]
        b = params[2 * layer + 1][...]                 # [out, 1]
        h = jnp.dot(w, h, preferred_element_type=jnp.float32) + b
        if layer != num_layers - 1:                    # ReLU on all but last
            h = jnp.maximum(h, 0.0)

    o_ref[...] = h.astype(o_ref.dtype)                 # [1, bt] lane-dense


# ----------------------------------------------------------------------------
# Wrapper / tiling policy
# ----------------------------------------------------------------------------
def _round_up(x, m):
    return ((x + m - 1) // m) * m


def _round_down(x, m):
    return (x // m) * m


def _vmem_capacity_bytes():
    """Per-core VMEM capacity; conservative fallback if the query fails."""
    try:
        info = pltpu.get_tpu_info()
        cap = getattr(info, "vmem_capacity_bytes", None)
        if cap:
            return int(cap)
    except Exception:
        pass
    return 64 * 1024 * 1024  # v7x per-core size (most restrictive)


def _choose_batch_tile(batch, n_features, out_dims, vmem_cap):
    """Pick a 128-aligned batch tile: big enough to amortize ~0.35us/step grid
    overhead, small enough to fit the VMEM budget, and <= batch//2 so v7x's
    two TensorCores both get grid steps."""
    # f32 bytes that scale with one batch column: double-buffered x rows,
    # every intermediate activation row, and the (padded) output rows.
    per_col = 4 * (2 * n_features + sum(out_dims) + 2 * 8)
    budget = vmem_cap // 4  # headroom for weights / compiler scratch
    vmem_tile = max(128, _round_down(budget // per_col, 128))
    half = max(128, _round_down(batch // 2, 128))  # >= 2 steps for v7x
    target = 4096                                   # amortize step overhead
    return min(target, vmem_tile, half)


def _vmem_estimate_bytes(batch_tile, n_features, weights):
    f32 = 4
    est = 2 * batch_tile * n_features * f32          # double-buffered x block
    est += 2 * 8 * batch_tile * f32                  # (1, bt) output block
    for w in weights:
        o, i = w.shape
        est += 2 * _round_up(o, 8) * _round_up(i, 128) * f32   # weight
        est += 2 * _round_up(o, 8) * 128 * f32                 # bias
        est += _round_up(o, 8) * batch_tile * f32              # activation
    return est


def mlp_forward(x, weights, biases, *, batch_tile=None, x_buffers=None):
    """Run the fused MLP Pallas kernel.

    x:       [batch, n_features] float32 (native batch-major layout)
    weights: list of [out_dim, in_dim] float32 (PyTorch nn.Linear layout)
    biases:  list of [out_dim, 1]      float32
    returns: [batch, 1] float32
    """
    batch, n_features = x.shape
    num_layers = len(weights)
    out_dims = [w.shape[0] for w in weights]
    vmem_cap = _vmem_capacity_bytes()

    if batch_tile is None:
        if batch < 256:
            batch_tile = batch                 # single small block
        else:
            batch_tile = _choose_batch_tile(batch, n_features, out_dims,
                                            vmem_cap)
    else:
        if batch_tile >= batch:
            batch_tile = batch
        else:
            batch_tile = max(128, _round_up(batch_tile, 128))

    num_tiles = pl.cdiv(batch, batch_tile)
    padded = num_tiles * batch_tile
    grid = (num_tiles,)

    # Input spec: native layout, batch on sublanes.  The last (partial) block
    # may read past the end of x; those columns only feed discarded output.
    if x_buffers is not None and x_buffers != 2:
        x_spec = pl.BlockSpec((batch_tile, n_features), lambda i: (i, 0),
                              pipeline_mode=pl.Buffered(x_buffers))
    else:
        x_spec = pl.BlockSpec((batch_tile, n_features), lambda i: (i, 0))

    in_specs = [x_spec]
    for w, b in zip(weights, biases):
        # Full-block, grid-invariant specs: fetched once, resident in VMEM.
        in_specs.append(pl.BlockSpec(w.shape, lambda i: (0, 0)))
        in_specs.append(pl.BlockSpec(b.shape, lambda i: (0, 0)))

    out_specs = pl.BlockSpec((1, batch_tile), lambda i: (0, i))

    need = _vmem_estimate_bytes(batch_tile, n_features, weights)
    vmem_limit = int(min(0.9 * vmem_cap, max(2 * need, 32 * 1024 * 1024)))

    kernel = functools.partial(_mlp_kernel, num_layers)

    out_row = pl.pallas_call(
        kernel,
        out_shape=jax.ShapeDtypeStruct((1, padded), jnp.float32),
        grid_spec=pl.GridSpec(
            grid=grid,
            in_specs=in_specs,
            out_specs=out_specs,
        ),
        compiler_params=pltpu.CompilerParams(
            dimension_semantics=("parallel",),
            vmem_limit_bytes=vmem_limit,
        ),
    )(x, *[p for wb in zip(weights, biases) for p in wb])

    return out_row[0, :batch].reshape(batch, 1)


# ----------------------------------------------------------------------------
# Params / reference
# ----------------------------------------------------------------------------
def init_mlp_params(key, n_features, mlp_dims):
    """Deterministic init matching torch.nn.Linear's default:
    W, b ~ U(-1/sqrt(fan_in), 1/sqrt(fan_in)). Weights stored as [out, in],
    biases as [out, 1] (columns for lane broadcast)."""
    dims = [n_features] + list(mlp_dims) + [1]
    weights, biases = [], []
    for d_in, d_out in zip(dims[:-1], dims[1:]):
        key, kw, kb = jax.random.split(key, 3)
        bound = 1.0 / jnp.sqrt(jnp.float32(d_in))
        weights.append(jax.random.uniform(kw, (d_out, d_in), jnp.float32,
                                          -bound, bound))
        biases.append(jax.random.uniform(kb, (d_out, 1), jnp.float32,
                                         -bound, bound))
    return weights, biases


def mlp_reference(x, weights, biases):
    """Plain-JAX reference for correctness checking."""
    h = x
    for i, (w, b) in enumerate(zip(weights, biases)):
        h = h @ w.T + b.T
        if i != len(weights) - 1:
            h = jnp.maximum(h, 0.0)
    return h


# ----------------------------------------------------------------------------
# Demo / self-test
# ----------------------------------------------------------------------------
if __name__ == "__main__":
    key = jax.random.PRNGKey(0)

    # Case 1: tiny RankNet-style config -> single-block path (grid=(1,)).
    batch, n_features, mlp_dims = 16, 16, [32, 32]
    lr = 1e-3  # unused in forward; kept for parity with the module signature
    key, kp, kx = jax.random.split(key, 3)
    weights, biases = init_mlp_params(kp, n_features, mlp_dims)
    x = jax.random.normal(kx, (batch, n_features), jnp.float32)

    out = jax.block_until_ready(mlp_forward(x, weights, biases))
    ref = mlp_reference(x, weights, biases)
    assert out.shape == (batch, 1), out.shape
    assert jnp.allclose(out, ref, atol=1e-5, rtol=1e-5), (
        f"max abs err {jnp.max(jnp.abs(out - ref))}"
    )

    # Case 2: larger, ragged batch -> tiled path (128-aligned lane-dense
    # output blocks, >=2 grid steps for v7x, last block reads past x's end).
    batch2, n_features2, mlp_dims2 = 520, 32, [64, 32]
    key, kp2, kx2 = jax.random.split(key, 3)
    weights2, biases2 = init_mlp_params(kp2, n_features2, mlp_dims2)
    x2 = jax.random.normal(kx2, (batch2, n_features2), jnp.float32)

    out2 = jax.block_until_ready(mlp_forward(x2, weights2, biases2))
    ref2 = mlp_reference(x2, weights2, biases2)
    assert out2.shape == (batch2, 1), out2.shape
    assert jnp.allclose(out2, ref2, atol=1e-5, rtol=1e-5), (
        f"max abs err {jnp.max(jnp.abs(out2 - ref2))}"
    )

    print("KERNEL_OK")
</pallas_src>

<mosaic_0001>
module attributes {stable_mosaic.version = 11 : i64} {
  func.func @_mlp_kernel(%arg0: i32, %arg1: memref<16x16xf32, #tpu.memory_space<vmem>>, %arg2: memref<32x16xf32, #tpu.memory_space<vmem>>, %arg3: memref<32x1xf32, #tpu.memory_space<vmem>>, %arg4: memref<32x32xf32, #tpu.memory_space<vmem>>, %arg5: memref<32x1xf32, #tpu.memory_space<vmem>>, %arg6: memref<1x32xf32, #tpu.memory_space<vmem>>, %arg7: memref<1x1xf32, #tpu.memory_space<vmem>>, %arg8: memref<1x16xf32, #tpu.memory_space<vmem>>) attributes {dimension_semantics = [#tpu.dimension_semantics<parallel>], iteration_bounds = array<i64: 1>, scalar_prefetch = 0 : i64, scratch_operands = 0 : i64, tpu.core_type = #tpu.core_type<tc>, window_params = [{transform_indices = @transform_0, window_bounds = array<i64: 16, 16>}, {pipeline_mode = #tpu.pipeline_mode<synchronous>, transform_indices = @transform_1, window_bounds = array<i64: 32, 16>}, {pipeline_mode = #tpu.pipeline_mode<synchronous>, transform_indices = @transform_2, window_bounds = array<i64: 32, 1>}, {pipeline_mode = #tpu.pipeline_mode<synchronous>, transform_indices = @transform_3, window_bounds = array<i64: 32, 32>}, {pipeline_mode = #tpu.pipeline_mode<synchronous>, transform_indices = @transform_4, window_bounds = array<i64: 32, 1>}, {pipeline_mode = #tpu.pipeline_mode<synchronous>, transform_indices = @transform_5, window_bounds = array<i64: 1, 32>}, {pipeline_mode = #tpu.pipeline_mode<synchronous>, transform_indices = @transform_6, window_bounds = array<i64: 1, 1>}, {transform_indices = @transform_7, window_bounds = array<i64: 1, 16>}]} {
    %c0 = arith.constant 0 : index
    %c0_0 = arith.constant 0 : index
    %0 = vector.load %arg1[%c0, %c0_0] : memref<16x16xf32, #tpu.memory_space<vmem>>, vector<16x16xf32>
    %c0_1 = arith.constant 0 : index
    %c0_2 = arith.constant 0 : index
    %1 = vector.load %arg2[%c0_1, %c0_2] : memref<32x16xf32, #tpu.memory_space<vmem>>, vector<32x16xf32>
    %c0_3 = arith.constant 0 : index
    %c0_4 = arith.constant 0 : index
    %2 = vector.load %arg3[%c0_3, %c0_4] : memref<32x1xf32, #tpu.memory_space<vmem>>, vector<32x1xf32>
    %cst = arith.constant dense<0.000000e+00> : vector<32x16xf32>
    %3 = tpu.matmul %1, %0, %cst {dimension_numbers = #tpu.dot_dimension_numbers<[1], [1], [0], [0], [0, 0, 1, 0], [], []>} : vector<32x16xf32>, vector<16x16xf32>, vector<32x16xf32> -> vector<32x16xf32>
    %4 = vector.broadcast %2 : vector<32x1xf32> to vector<32x16xf32>
    %5 = arith.addf %3, %4 : vector<32x16xf32>
    %cst_5 = arith.constant 0.000000e+00 : f32
    %6 = vector.broadcast %cst_5 : f32 to vector<32x16xf32>
    %7 = arith.maximumf %5, %6 : vector<32x16xf32>
    %c0_6 = arith.constant 0 : index
    %c0_7 = arith.constant 0 : index
    %8 = vector.load %arg4[%c0_6, %c0_7] : memref<32x32xf32, #tpu.memory_space<vmem>>, vector<32x32xf32>
    %c0_8 = arith.constant 0 : index
    %c0_9 = arith.constant 0 : index
    %9 = vector.load %arg5[%c0_8, %c0_9] : memref<32x1xf32, #tpu.memory_space<vmem>>, vector<32x1xf32>
    %cst_10 = arith.constant dense<0.000000e+00> : vector<32x16xf32>
    %10 = tpu.matmul %8, %7, %cst_10 {dimension_numbers = #tpu.dot_dimension_numbers<[1], [0], [0], [1], [0, 0, 1, 1], [], []>} : vector<32x32xf32>, vector<32x16xf32>, vector<32x16xf32> -> vector<32x16xf32>
    %11 = vector.broadcast %9 : vector<32x1xf32> to vector<32x16xf32>
    %12 = arith.addf %10, %11 : vector<32x16xf32>
    %cst_11 = arith.constant 0.000000e+00 : f32
    %13 = vector.broadcast %cst_11 : f32 to vector<32x16xf32>
    %14 = arith.maximumf %12, %13 : vector<32x16xf32>
    %c0_12 = arith.constant 0 : index
    %c0_13 = arith.constant 0 : index
    %15 = vector.load %arg6[%c0_12, %c0_13] : memref<1x32xf32, #tpu.memory_space<vmem>>, vector<1x32xf32>
    %c0_14 = arith.constant 0 : index
    %c0_15 = arith.constant 0 : index
    %16 = vector.load %arg7[%c0_14, %c0_15] : memref<1x1xf32, #tpu.memory_space<vmem>>, vector<1x1xf32>
    %cst_16 = arith.constant dense<0.000000e+00> : vector<1x16xf32>
    %17 = tpu.matmul %15, %14, %cst_16 {dimension_numbers = #tpu.dot_dimension_numbers<[1], [0], [0], [1], [0, 0, 1, 1], [], []>} : vector<1x32xf32>, vector<32x16xf32>, vector<1x16xf32> -> vector<1x16xf32>
    %18 = vector.broadcast %16 : vector<1x1xf32> to vector<1x16xf32>
    %19 = arith.addf %17, %18 : vector<1x16xf32>
    %c0_17 = arith.constant 0 : index
    %c0_18 = arith.constant 0 : index
    %20 = vector.load %arg8[%c0_17, %c0_18] : memref<1x16xf32, #tpu.memory_space<vmem>>, vector<1x16xf32>
    tpu.vector_store %arg8[%c0_17, %c0_18], %19 {strides = array<i32>} : memref<1x16xf32, #tpu.memory_space<vmem>>, vector<1x16xf32>,
    return
  }
  func.func @transform_0(%arg0: i32) -> (i32, i32) {
    %c0_i32 = arith.constant 0 : i32
    %c0_i32_0 = arith.constant 0 : i32
    return %arg0, %c0_i32 : i32, i32
  }
  func.func @transform_1(%arg0: i32) -> (i32, i32) {
    %c0_i32 = arith.constant 0 : i32
    %c0_i32_0 = arith.constant 0 : i32
    %c0_i32_1 = arith.constant 0 : i32
    return %c0_i32, %c0_i32_0 : i32, i32
  }
  func.func @transform_2(%arg0: i32) -> (i32, i32) {
    %c0_i32 = arith.constant 0 : i32
    %c0_i32_0 = arith.constant 0 : i32
    %c0_i32_1 = arith.constant 0 : i32
    return %c0_i32, %c0_i32_0 : i32, i32
  }
  func.func @transform_3(%arg0: i32) -> (i32, i32) {
    %c0_i32 = arith.constant 0 : i32
    %c0_i32_0 = arith.constant 0 : i32
    %c0_i32_1 = arith.constant 0 : i32
    return %c0_i32, %c0_i32_0 : i32, i32
  }
  func.func @transform_4(%arg0: i32) -> (i32, i32) {
    %c0_i32 = arith.constant 0 : i32
    %c0_i32_0 = arith.constant 0 : i32
    %c0_i32_1 = arith.constant 0 : i32
    return %c0_i32, %c0_i32_0 : i32, i32
  }
  func.func @transform_5(%arg0: i32) -> (i32, i32) {
    %c0_i32 = arith.constant 0 : i32
    %c0_i32_0 = arith.constant 0 : i32
    %c0_i32_1 = arith.constant 0 : i32
    return %c0_i32, %c0_i32_0 : i32, i32
  }
  func.func @transform_6(%arg0: i32) -> (i32, i32) {
    %c0_i32 = arith.constant 0 : i32
    %c0_i32_0 = arith.constant 0 : i32
    %c0_i32_1 = arith.constant 0 : i32
    return %c0_i32, %c0_i32_0 : i32, i32
  }
  func.func @transform_7(%arg0: i32) -> (i32, i32) {
    %c0_i32 = arith.constant 0 : i32
    %c0_i32_0 = arith.constant 0 : i32
    return %c0_i32, %arg0 : i32, i32
  }
}

</mosaic_0001>

<bundles_post_ra>
// kernel: tpu_custom_call.1
= control target key start
LH: loop header
LB: loop body
LE: loop exit
PB: predicated region body
PF: predicated region fallthrough
CT: control target
= control target key end

     0   :  { %s610_s0 = inlined_call_operand.vmem [shape: f32[16,16], index: 0, kind: input, shape index: {}]   ;;  %s611_s1 = inlined_call_operand.vmem [shape: f32[32,16], index: 1, kind: input, shape index: {}]   ;;  %s612_s2 = inlined_call_operand.vmem [shape: f32[32,1], index: 2, kind: input, shape index: {}]   ;;  %s613_s3 = inlined_call_operand.vmem [shape: f32[32,32], index: 3, kind: input, shape index: {}]   ;;  %s614_s4 = inlined_call_operand.vmem [shape: f32[32,1], index: 4, kind: input, shape index: {}]   ;;  %s615_s5 = inlined_call_operand.vmem [shape: f32[1,32], index: 5, kind: input, shape index: {}]   ;;  %s616_s6 = inlined_call_operand.<no memory space> [shape: f32[1,1], index: 6, kind: input, shape index: {}]   ;;  %s617_s7 = inlined_call_operand.hbm [shape: f32[1,16], index: 7, kind: output, shape index: {}]  }
   0x1   :  { %v12_v0 = vstv %s616_s6 }
   0x2   :  { %13 = vst [vmem:[#allocation2] sm:$0x1] %v12_v0 }
   0x3   :  { %v30_v1 = vld [vmem:[%s610_s0 + $0x8] sm:$0xff]  ;;  %vm59_vm0 = vcmask 130048   ;;  %v29_v2 = vld [vmem:[%s610_s0] sm:$0xff]  ;;  %v490_v4 = vmov 0   ;;  %v38_v5 = vld [vmem:[%s612_s2 + $0x18] sm:$0xff] }
   0x4   :  { %v31_v3 = vld [vmem:[%s611_s1] sm:$0xff]  ;;  %427 = vmatprep.subr.msk.mxu0 %vm59_vm0, %v30_v1  ;;  %466 = vset.pattern.permute.xlu0 %v490_v4  ;;  %v36_v6 = vld [vmem:[%s612_s2 + $0x8] sm:$0xff]  ;;  %v37_v7 = vld [vmem:[%s612_s2 + $0x10] sm:$0xff] }
   0x5   :  { %431 = vmatprep.mubr.msk.f32.mxu0 %vm59_vm0, %v31_v3  ;;  %428 = vmatpush3.xpose.msk.msra.mxu0 %vm59_vm0, %v30_v1 }
   0x6   :  { %429 = vmatprep.subr.msk.mxu0 %vm59_vm0, %v29_v2  ;;  %56 = vperm.xlu0 %466, %v38_v5  }
   0x7   :  { %467 = vset.pattern.permute.xlu1 %v490_v4 }
   0x8   :  { %46 = vperm.xlu1 %467, %v36_v6  }
   0x9   :  { %14 = vsyncpa [#allocation4], 0  ;;  %430 = vmatpush3.xpose.msk.msra.mxu0 %vm59_vm0, %v29_v2  ;;  %v32_v8 = vld [vmem:[%s611_s1 + $0x8] sm:$0xff]  ;;  %v35_v9 = vld [vmem:[%s612_s2] sm:$0xff]  ;;  %vm195_vm1 = vcmask 261120   ;;  %v491_v37 = vmov 0.0   ;;  %v304_v55 = vlaneseq }
   0xa   :  { %v33_v10 = vld [vmem:[%s611_s1 + $0x10] sm:$0xff]  ;;  %51 = vperm.xlu0 %466, %v37_v7   ;;  %v174_v11 = vld [vmem:[%s614_s4 + $0x18] sm:$0xff]  ;;  %v172_v14 = vld [vmem:[%s614_s4 + $0x8] sm:$0xff]  ;;  %451 = vmatprep.subr.mxu0 %v491_v37  ;;  %vm492_vm2 = vmmov 0   ;;  %s493_s10 = smov [#allocation3]   ;;  %vm381_vm3 = vcmask 122880  }
   0xb   :  { %v34_v12 = vld [vmem:[%s611_s1 + $0x18] sm:$0xff]  ;;  %v173_v13 = vld [vmem:[%s614_s4 + $0x10] sm:$0xff]  ;;  %v171_v15 = vld [vmem:[%s614_s4] sm:$0xff]  ;;  %v305_v56 = vshrl.u32 %v304_v55, 7  ;;  %s389_s11 = sshll.u32 %s493_s10, 4  ;;  %s390_s11 = int_to_ptr.vmem [resolvable:$true] %s389_s11 }
   0xc   :  { %432 = vmatmul.mubr.msk.f32.vlgmr.msra.gmra.mxu0 %vm59_vm0, %v32_v8  ;;  %41 = vperm.xlu1 %467, %v35_v9   ;;  %v298_v16 = vld [vmem:[#allocation2] sm:$0x1]  ;;  %v168_v34 = vld [vmem:[%s613_s3 + $0x8] sm:$0xff]  ;;  %v169_v35 = vld [vmem:[%s613_s3 + $0x10] sm:$0xff]  ;;  %s468_s12 = scalar_lea.vmem %s390_s11, 16  ;;  %p473_p1 = scmp.lt.s32.totalorder %s390_s11, %s390_s11 }
   0xd   :  { %434 = vmatprep.mubr.msk.f32.mxu0 %vm59_vm0, %v33_v10  ;;  %v167_v17 = vld [vmem:[%s613_s3] sm:$0xff]  ;;  %v170_v36 = vld [vmem:[%s613_s3 + $0x18] sm:$0xff]  ;;  %v306_v57 = vsub.s32 0, %v305_v56  ;;  %p469_p0 = scmp.ne.s32.totalorder %s390_s11, %s468_s12 }
   0xe   :  { %192 = vperm.xlu0 %466, %v174_v11   ;;  %445 = vmatprep.mubr.msk.f32.mxu1 %vm195_vm1, %v167_v17  ;;  %v297_v54 = vld [vmem:[%s615_s5] sm:$0x1]  ;;  %s472_s5 = scalar_lea.vmem %s390_s11, 32 }
   0xf   :  { %p474_p2 = scmp.lt.s32.totalorder %s472_s5, %s468_s12 }
  0x10   :  { %435 = vmatmul.mubr.msk.f32.gmra.mxu0 %vm59_vm0, %v34_v12  ;;  %187 = vperm.xlu1 %467, %v173_v13  }
  0x11   :  { %459 = vmatprep.mubr.msk.f32.mxu0 %vm492_vm2, %v491_v37  ;;  %p475_p3 = por %p474_p2, %p473_p1 }
  0x12   :  { %182 = vperm.xlu0 %466, %v172_v14  }
  0x13   :  { %p476_p4 = pnand %p475_p3, %p469_p0 }
  0x14   :  { %177 = vperm.xlu1 %467, %v171_v15  }
  0x16   :  { %301 = vperm.xlu0 %466, %v298_v16  }
  0x81   :  { %v57_v18 = vpop.permute.xlu0 %56 }
  0x83   :  { %v47_v20 = vpop.permute.xlu1 %46 }
  0x85   :  { %v52_v24 = vpop.permute.xlu0 %51 }
  0x87   :  { %v42_v29 = vpop.permute.xlu1 %41 }
  0x89   :  { %v193_v38 = vpop.permute.xlu0 %192 }
  0x8b   :  { %v188_v40 = vpop.permute.xlu1 %187 }
  0x8d   :  { %v183_v44 = vpop.permute.xlu0 %182 }
  0x8f   :  { %v178_v49 = vpop.permute.xlu1 %177 }
  0x91   :  { %v302_v58 = vpop.permute.xlu0 %301 }
  0x92   :  { %v307_v59 = vrot.slane %v302_v58, %v306_v57 }
  0xcc   :  { %v433_v19 = vpop.f32.mrf.mxu0 }
  0xcd   :  { %v150_v26 = vadd.f32 %v433_v19, %v47_v20 }
  0xce   :  { %v144_v21 = vpop.f32.mrf.mxu0 }
  0xcf   :  { %v145_v30 = vadd.f32 %v144_v21, %v42_v29  ;;  %v164_v32 = vmax.f32 %v150_v26, 0.0 }
  0xd0   :  { %v436_v22 = vpop.f32.mrf.mxu0 }
  0xd1   :  { %v160_v23 = vadd.f32 %v436_v22, %v57_v18  ;;  %v163_v33 = vmax.f32 %v145_v30, 0.0 }
  0xd2   :  { %v154_v25 = vpop.f32.mrf.mxu0 }
  0xd3   :  { %v166_v27 = vmax.f32 %v160_v23, 0.0  ;;  %v155_v28 = vadd.f32 %v154_v25, %v52_v24 }
  0xd5   :  { %v165_v31 = vmax.f32 %v155_v28, 0.0  ;;  %437 = vmatprep.subr.mxu1 %v166_v27 }
  0xd6   :  { %438 = vmatpush3.msra.mxu1 %v166_v27 }
  0xd7   :  { %439 = vmatprep.subr.mxu1 %v165_v31 }
  0xd8   :  { %440 = vmatpush3.msra.mxu1 %v165_v31 }
  0xd9   :  { %441 = vmatprep.subr.mxu1 %v164_v32 }
  0xda   :  { %442 = vmatpush3.msra.mxu1 %v164_v32 }
  0xdb   :  { %443 = vmatprep.subr.mxu1 %v163_v33 }
  0xdc   :  { %444 = vmatpush3.msra.mxu1 %v163_v33 }
  0xdd   :  { %446 = vmatmul.mubr.msk.f32.vlgmr.msra.gmra.mxu1 %vm195_vm1, %v168_v34 }
  0xde   :  { %448 = vmatprep.mubr.msk.f32.mxu1 %vm195_vm1, %v169_v35 }
  0xe1   :  { %449 = vmatmul.mubr.msk.f32.gmra.mxu1 %vm195_vm1, %v170_v36 }
 0x19d   :  { %v447_v39 = vpop.f32.mrf.mxu1 }
 0x19e   :  { %v280_v46 = vadd.f32 %v447_v39, %v183_v44 }
 0x19f   :  { %v274_v41 = vpop.f32.mrf.mxu1 }
 0x1a0   :  { %v275_v50 = vadd.f32 %v274_v41, %v178_v49  ;;  %v294_v52 = vmax.f32 %v280_v46, 0.0 }
 0x1a1   :  { %v450_v42 = vpop.f32.mrf.mxu1 }
 0x1a2   :  { %v290_v43 = vadd.f32 %v450_v42, %v193_v38  ;;  %v293_v53 = vmax.f32 %v275_v50, 0.0 }
 0x1a3   :  { %v284_v45 = vpop.f32.mrf.mxu1 }
 0x1a4   :  { %v296_v47 = vmax.f32 %v290_v43, 0.0  ;;  %v285_v48 = vadd.f32 %v284_v45, %v188_v40 }
 0x1a6   :  { %v295_v51 = vmax.f32 %v285_v48, 0.0  ;;  %452 = vmatpush3.msra.mxu0 %v296_v47 }
 0x1a7   :  { %453 = vmatprep.subr.mxu0 %v491_v37 }
 0x1a8   :  { %454 = vmatpush3.msra.mxu0 %v295_v51 }
 0x1a9   :  { %455 = vmatprep.subr.mxu0 %v491_v37 }
 0x1aa   :  { %456 = vmatpush3.msra.mxu0 %v294_v52 }
 0x1ab   :  { %457 = vmatprep.subr.mxu0 %v491_v37 }
 0x1ac   :  { %458 = vmatpush3.msra.mxu0 %v293_v53 }
 0x1ad   :  { %460 = vmatmul.mubr.msk.f32.vlgmr.msra.gmra.mxu0 %vm195_vm1, %v297_v54 }
 0x26d   :  { %v377_v60 = vpop.f32.mrf.mxu0 }
 0x26e   :  { %v378_v61 = vadd.f32 %v377_v60, %v307_v59 }
 0x26f   :  { %v461_v62 = vpop.f32.mrf.mxu0 }
 0x270   :  { %382 = vst.msk [vmem:[#allocation3] sm:$0x1] %vm381_vm3, %v378_v61 }
 0x271   :  { %479 = shalt.err (!%p476_p4)
}
 0x272   :  { %392 = dma.vmem_to_hbm [thread:$0]  %s390_s11, 16, %s617_s7, [#allocation4]  }
 0x273   :  { %488 = dma.done.wait [#allocation4], 16  }
 0x274   :  { %489 = vsyncadd [#allocation4], 4294967280 }
 0x275   :  { %396 = vsyncpa [#allocation4], 1 }

</bundles_post_ra>
